<compile_context>
chip_gen: v6e
topology: v6e:2x2x1
jax: 0.10.0
libtpu: 0.0.40
codegen_flags: <defaults>
</compile_context>

<pallas_src>
import functools

import jax
import jax.numpy as jnp
from jax import lax
from jax.experimental import pallas as pl
from jax.experimental.pallas import tpu as pltpu


def _round_up(x, m):
    return (x + m - 1) // m * m


def _cdiv(a, b):
    return (a + b - 1) // b


def _apply_act(y, act):
    if act == "relu":
        return jnp.maximum(y, 0.0)
    if act == "silu":
        return y * jax.nn.sigmoid(y)
    return y  # Identity


# ----------------------------------------------------------------------------
# Training pass 1: conv tile (one MXU contraction) + per-core stat partials.
# ----------------------------------------------------------------------------
def _conv_stats_kernel(p_ref, w_ref, y_ref, sum_ref, sq_ref):
    """p_ref: (TM, KP) bf16 patches; w_ref: (KP, CP) bf16 weight (grid-resident).

    y_ref:   (TM, CP) bf16 conv output tile (lane-dense 128-wide stores)
    sum_ref: (8, CP)  f32 per-core per-channel sum   (accumulated over inner axis)
    sq_ref:  (8, CP)  f32 per-core per-channel sumsq (accumulated over inner axis)
    """
    @pl.when(pl.program_id(1) == 0)
    def _():
        sum_ref[...] = jnp.zeros_like(sum_ref)
        sq_ref[...] = jnp.zeros_like(sq_ref)

    acc = jnp.dot(p_ref[...], w_ref[...], preferred_element_type=jnp.float32)
    y_ref[...] = acc.astype(y_ref.dtype)          # bf16 intermediate (halves HBM)
    psum = jnp.sum(acc, axis=0, keepdims=True)    # (1, CP), from the f32 acc
    psq = jnp.sum(acc * acc, axis=0, keepdims=True)
    # Accumulate the same value into all 8 sublanes so the stat block keeps the
    # (8, 128)-aligned shape; the wrapper reads sublane 0 of each core's block.
    sum_ref[...] += jnp.broadcast_to(psum, sum_ref.shape)
    sq_ref[...] += jnp.broadcast_to(psq, sq_ref.shape)


# ----------------------------------------------------------------------------
# Training pass 2: hoisted per-channel scale/shift + activation (elementwise).
# ----------------------------------------------------------------------------
def _bn_act_kernel(y_ref, scale_ref, shift_ref, o_ref, *, act):
    y = y_ref[...].astype(jnp.float32) * scale_ref[...] + shift_ref[...]
    o_ref[...] = _apply_act(y, act).astype(o_ref.dtype)


# ----------------------------------------------------------------------------
# Eval mode: fully fused conv + BN(running stats) + activation, single pass.
# ----------------------------------------------------------------------------
def _conv_bn_act_kernel(p_ref, w_ref, scale_ref, shift_ref, o_ref, *, act):
    acc = jnp.dot(p_ref[...], w_ref[...], preferred_element_type=jnp.float32)
    y = acc * scale_ref[...] + shift_ref[...]
    o_ref[...] = _apply_act(y, act).astype(o_ref.dtype)


def _compiler_params(sem, tm, kp, cp, out_itemsize):
    """dimension_semantics + an explicit, v7x-safe VMEM budget."""
    kp_vmem = _round_up(kp, 128)            # VMEM layout pads the lane dim
    per_step = (tm * kp_vmem * 2            # patch / y-in tile (bf16)
                + kp_vmem * cp * 2          # grid-resident weight (bf16)
                + tm * cp * out_itemsize    # output tile
                + 8 * cp * 4 * 4)           # stat / scale-shift vectors
    budget = 2 * per_step + (2 << 20)       # double-buffered + slack
    budget = min(max(budget, 32 << 20), 64 << 20)   # 64 MiB = v7x physical
    return pltpu.CompilerParams(dimension_semantics=sem,
                                vmem_limit_bytes=int(budget))


# ----------------------------------------------------------------------------
# Public wrapper: NCHW in / NCHW out (matches the PyTorch module).
# ----------------------------------------------------------------------------
def conv_norm_layer(x_nchw, weight_oihw, gamma, beta, running_mean, running_var,
                    *, stride=1, padding=None, eps=1e-5, act=None, training=True,
                    mxu_dtype=jnp.bfloat16, tile_m=512):
    """ConvNormLayer.forward: act(BatchNorm2d(Conv2d(x)))."""
    if act not in (None, "relu", "silu"):
        raise ValueError(f"unsupported act: {act}")

    N, Cin, H, W = x_nchw.shape
    Cout, Cin_w, K, K2 = weight_oihw.shape
    assert Cin_w == Cin and K == K2
    pad = (K - 1) // 2 if padding is None else padding
    Hout = (H + 2 * pad - K) // stride + 1
    Wout = (W + 2 * pad - K) // stride + 1
    M = N * Hout * Wout
    Kdim = K * K * Cin

    CP = _round_up(Cout, 128)          # lane-dense output channels
    KP = _round_up(Kdim, 16)           # contraction dim: no 128-padding needed
                                       # (block last dim == full array dim)
    TM = _round_up(min(tile_m, M), 8)  # rows per grid step
    n_tiles = _cdiv(M, TM)
    # Training pass 1 splits tiles over 2 TensorCores (v7x); eval / pass 2 are
    # already pure "parallel" grids.
    NC = 2 if (training and n_tiles >= 2) else 1
    tpc = _cdiv(n_tiles, NC)           # tiles per core
    n_tiles_total = (NC * tpc) if training else n_tiles
    MP = n_tiles_total * TM

    # ---- wrapper glue: layout + im2col, done in bf16 (halves slab traffic) ----
    x_nhwc = jnp.transpose(x_nchw, (0, 2, 3, 1)).astype(mxu_dtype)
    x_pad = jnp.pad(x_nhwc, ((0, 0), (pad, pad), (pad, pad), (0, 0)))
    slabs = []
    for kh in range(K):
        for kw in range(K):
            slabs.append(lax.slice(
                x_pad,
                (0, kh, kw, 0),
                (N, kh + (Hout - 1) * stride + 1,
                 kw + (Wout - 1) * stride + 1, Cin),
                (1, stride, stride, 1)))            # (N, Hout, Wout, Cin)
    patches = jnp.concatenate(slabs, axis=-1).reshape(M, Kdim)
    patches = jnp.pad(patches, ((0, MP - M), (0, KP - Kdim)))

    # Weight: (Cout, Cin, K, K) -> (K, K, Cin, Cout) -> (Kdim, Cout), padded.
    w2 = jnp.transpose(weight_oihw, (2, 3, 1, 0)).reshape(Kdim, Cout)
    w2 = jnp.pad(w2, ((0, KP - Kdim), (0, CP - Cout))).astype(mxu_dtype)

    gamma_p = jnp.pad(gamma.astype(jnp.float32), (0, CP - Cout),
                      constant_values=1.0).reshape(1, CP)
    beta_p = jnp.pad(beta.astype(jnp.float32), (0, CP - Cout)).reshape(1, CP)

    out_dtype = x_nchw.dtype
    out_itemsize = jnp.dtype(out_dtype).itemsize

    if not training:
        # ---- eval: precompute scale/shift from running stats, fuse everything.
        mean = jnp.pad(running_mean.astype(jnp.float32),
                       (0, CP - Cout)).reshape(1, CP)
        var = jnp.pad(running_var.astype(jnp.float32), (0, CP - Cout),
                      constant_values=1.0).reshape(1, CP)
        scale = gamma_p * lax.rsqrt(var + eps)
        shift = beta_p - mean * scale

        out_p = pl.pallas_call(
            functools.partial(_conv_bn_act_kernel, act=act),
            out_shape=jax.ShapeDtypeStruct((MP, CP), out_dtype),
            grid=(n_tiles_total,),
            in_specs=[pl.BlockSpec((TM, KP), lambda i: (i, 0)),
                      pl.BlockSpec((KP, CP), lambda i: (0, 0)),
                      pl.BlockSpec((1, CP), lambda i: (0, 0)),
                      pl.BlockSpec((1, CP), lambda i: (0, 0))],
            out_specs=pl.BlockSpec((TM, CP), lambda i: (i, 0)),
            compiler_params=_compiler_params(("parallel",), TM, KP, CP,
                                             out_itemsize),
        )(patches, w2, scale, shift)
    else:
        # ---- pass 1: conv + per-core per-channel sum / sumsq ----
        y_mid, s_sum, s_sq = pl.pallas_call(
            _conv_stats_kernel,
            out_shape=(jax.ShapeDtypeStruct((MP, CP), mxu_dtype),
                       jax.ShapeDtypeStruct((NC * 8, CP), jnp.float32),
                       jax.ShapeDtypeStruct((NC * 8, CP), jnp.float32)),
            grid=(NC, tpc),
            in_specs=[pl.BlockSpec((TM, KP), lambda c, i: (c * tpc + i, 0)),
                      pl.BlockSpec((KP, CP), lambda c, i: (0, 0))],
            out_specs=(pl.BlockSpec((TM, CP), lambda c, i: (c * tpc + i, 0)),
                       pl.BlockSpec((8, CP), lambda c, i: (c, 0)),
                       pl.BlockSpec((8, CP), lambda c, i: (c, 0))),
            compiler_params=_compiler_params(("parallel", "arbitrary"),
                                             TM, KP, CP, 2),
        )(patches, w2)

        # Padded rows are all-zero patches -> contribute 0 to sum/sumsq, so
        # dividing by the true M gives exact batch statistics (biased variance,
        # as PyTorch uses for normalization in training mode).
        total_sum = jnp.sum(s_sum.reshape(NC, 8, CP)[:, 0, :], axis=0)
        total_sq = jnp.sum(s_sq.reshape(NC, 8, CP)[:, 0, :], axis=0)
        mean = (total_sum / float(M)).reshape(1, CP)
        var = jnp.maximum(total_sq / float(M) - mean * mean, 0.0)  # clamp >= 0
        scale = gamma_p * lax.rsqrt(var + eps)
        shift = beta_p - mean * scale

        # ---- pass 2: fused scale/shift + activation, lane-dense output ----
        out_p = pl.pallas_call(
            functools.partial(_bn_act_kernel, act=act),
            out_shape=jax.ShapeDtypeStruct((MP, CP), out_dtype),
            grid=(n_tiles_total,),
            in_specs=[pl.BlockSpec((TM, CP), lambda i: (i, 0)),
                      pl.BlockSpec((1, CP), lambda i: (0, 0)),
                      pl.BlockSpec((1, CP), lambda i: (0, 0))],
            out_specs=pl.BlockSpec((TM, CP), lambda i: (i, 0)),
            compiler_params=_compiler_params(("parallel",), TM, CP, CP,
                                             out_itemsize),
        )(y_mid, scale, shift)

    # Wrapper glue: strip padding, back to NCHW.
    out = out_p[:M, :Cout].reshape(N, Hout, Wout, Cout)
    return jnp.transpose(out, (0, 3, 1, 2))


# ----------------------------------------------------------------------------
# Pure-JAX reference mirroring the PyTorch module.
# ----------------------------------------------------------------------------
def _reference(x_nchw, weight_oihw, gamma, beta, running_mean, running_var,
               *, stride, padding, eps, act, training, conv_dtype=jnp.float32):
    K = weight_oihw.shape[-1]
    pad = (K - 1) // 2 if padding is None else padding
    y = lax.conv_general_dilated(
        x_nchw.astype(conv_dtype), weight_oihw.astype(conv_dtype),
        window_strides=(stride, stride), padding=[(pad, pad), (pad, pad)],
        dimension_numbers=("NCHW", "OIHW", "NCHW"),
        preferred_element_type=jnp.float32)
    if training:
        mean = jnp.mean(y, axis=(0, 2, 3))
        var = jnp.mean((y - mean[None, :, None, None]) ** 2, axis=(0, 2, 3))
    else:
        mean, var = running_mean, running_var
    y = (y - mean[None, :, None, None]) * lax.rsqrt(var[None, :, None, None] + eps)
    y = y * gamma[None, :, None, None] + beta[None, :, None, None]
    if act == "relu":
        y = jnp.maximum(y, 0.0)
    elif act == "silu":
        y = y * jax.nn.sigmoid(y)
    return y


if __name__ == "__main__":
    # Module config: ConvNormLayer(ch_in=4, ch_out=8, kernel_size=3, stride=1)
    ch_in, ch_out, ksize, stride = 4, 8, 3, 1
    N, H, W = 2, 16, 16

    key = jax.random.PRNGKey(0)
    k_x, k_w, k_g, k_b, k_rm, k_rv = jax.random.split(key, 6)

    x = jax.random.normal(k_x, (N, ch_in, H, W), dtype=jnp.float32)
    weight = jax.random.normal(k_w, (ch_out, ch_in, ksize, ksize),
                               dtype=jnp.float32) * 0.1
    gamma = 1.0 + 0.1 * jax.random.normal(k_g, (ch_out,), dtype=jnp.float32)
    beta = 0.1 * jax.random.normal(k_b, (ch_out,), dtype=jnp.float32)
    running_mean = 0.1 * jax.random.normal(k_rm, (ch_out,), dtype=jnp.float32)
    running_var = jax.random.uniform(k_rv, (ch_out,), dtype=jnp.float32,
                                     minval=0.5, maxval=1.5)

    ref_tr_bf16 = _reference(x, weight, gamma, beta, running_mean, running_var,
                             stride=stride, padding=None, eps=1e-5, act=None,
                             training=True, conv_dtype=jnp.bfloat16)
    ref_tr_f32 = _reference(x, weight, gamma, beta, running_mean, running_var,
                            stride=stride, padding=None, eps=1e-5, act=None,
                            training=True, conv_dtype=jnp.float32)

    # --- training mode (fresh module default): batch stats, Identity act ---
    out = conv_norm_layer(x, weight, gamma, beta, running_mean, running_var,
                          stride=stride, padding=None, eps=1e-5, act=None,
                          training=True)
    out = jax.block_until_ready(out)
    assert out.shape == (N, ch_out, H, W), out.shape
    # bf16 MXU operands + bf16 intermediate vs identically-quantized reference.
    assert jnp.allclose(out, ref_tr_bf16, atol=2e-2, rtol=2e-2), (
        float(jnp.max(jnp.abs(out - ref_tr_bf16))))
    assert jnp.allclose(out, ref_tr_f32, atol=5e-2, rtol=5e-2), (
        float(jnp.max(jnp.abs(out - ref_tr_f32))))

    # --- training mode, small tiles: exercises multi-tile accumulation, the
    # 2-way per-core stat split, and zero-padded tail tiles ---
    out_tiled = conv_norm_layer(x, weight, gamma, beta, running_mean,
                                running_var, stride=stride, padding=None,
                                eps=1e-5, act=None, training=True, tile_m=192)
    out_tiled = jax.block_until_ready(out_tiled)
    assert jnp.allclose(out_tiled, ref_tr_bf16, atol=2e-2, rtol=2e-2), (
        float(jnp.max(jnp.abs(out_tiled - ref_tr_bf16))))

    # --- eval mode (running stats) + silu activation: single fused kernel ---
    out_eval = conv_norm_layer(x, weight, gamma, beta, running_mean, running_var,
                               stride=stride, padding=None, eps=1e-5, act="silu",
                               training=False)
    out_eval = jax.block_until_ready(out_eval)
    ref_eval = _reference(x, weight, gamma, beta, running_mean, running_var,
                          stride=stride, padding=None, eps=1e-5, act="silu",
                          training=False, conv_dtype=jnp.bfloat16)
    assert jnp.allclose(out_eval, ref_eval, atol=5e-3, rtol=5e-3), (
        float(jnp.max(jnp.abs(out_eval - ref_eval))))

    print("KERNEL_OK")
</pallas_src>

<mosaic_0001>
module attributes {stable_mosaic.version = 11 : i64} {
  func.func @_conv_stats_kernel(%arg0: i32, %arg1: i32, %arg2: memref<512x48xbf16, #tpu.memory_space<vmem>>, %arg3: memref<48x128xbf16, #tpu.memory_space<vmem>>, %arg4: memref<512x128xbf16, #tpu.memory_space<vmem>>, %arg5: memref<8x128xf32, #tpu.memory_space<vmem>>, %arg6: memref<8x128xf32, #tpu.memory_space<vmem>>) attributes {dimension_semantics = [#tpu.dimension_semantics<parallel>, #tpu.dimension_semantics<arbitrary>], iteration_bounds = array<i64: 1, 1>, scalar_prefetch = 0 : i64, scratch_operands = 0 : i64, tpu.core_type = #tpu.core_type<tc>, window_params = [{transform_indices = @transform_0, window_bounds = array<i64: 512, 48>}, {pipeline_mode = #tpu.pipeline_mode<synchronous>, transform_indices = @transform_1, window_bounds = array<i64: 48, 128>}, {transform_indices = @transform_2, window_bounds = array<i64: 512, 128>}, {transform_indices = @transform_3, window_bounds = array<i64: 8, 128>}, {transform_indices = @transform_4, window_bounds = array<i64: 8, 128>}]} {
    %c0_i32 = arith.constant 0 : i32
    %0 = arith.cmpi eq, %arg1, %c0_i32 : i32
    %1 = arith.extui %0 : i1 to i32
    %c0_i32_0 = arith.constant 0 : i32
    %2 = arith.cmpi ne, %1, %c0_i32_0 : i32
    scf.if %2 {
      %cst_16 = arith.constant 0.000000e+00 : f32
      %23 = vector.broadcast %cst_16 : f32 to vector<8x128xf32>
      %c0_17 = arith.constant 0 : index
      %c0_18 = arith.constant 0 : index
      %24 = vector.load %arg5[%c0_17, %c0_18] : memref<8x128xf32, #tpu.memory_space<vmem>>, vector<8x128xf32>
      tpu.vector_store %arg5[%c0_17, %c0_18], %23 {strides = array<i32>} : memref<8x128xf32, #tpu.memory_space<vmem>>, vector<8x128xf32>,
      %cst_19 = arith.constant 0.000000e+00 : f32
      %25 = vector.broadcast %cst_19 : f32 to vector<8x128xf32>
      %c0_20 = arith.constant 0 : index
      %c0_21 = arith.constant 0 : index
      %26 = vector.load %arg6[%c0_20, %c0_21] : memref<8x128xf32, #tpu.memory_space<vmem>>, vector<8x128xf32>
      tpu.vector_store %arg6[%c0_20, %c0_21], %25 {strides = array<i32>} : memref<8x128xf32, #tpu.memory_space<vmem>>, vector<8x128xf32>,
    } else {
    }
    %c0 = arith.constant 0 : index
    %c0_1 = arith.constant 0 : index
    %3 = vector.load %arg2[%c0, %c0_1] : memref<512x48xbf16, #tpu.memory_space<vmem>>, vector<512x48xbf16>
    %c0_2 = arith.constant 0 : index
    %c0_3 = arith.constant 0 : index
    %4 = vector.load %arg3[%c0_2, %c0_3] : memref<48x128xbf16, #tpu.memory_space<vmem>>, vector<48x128xbf16>
    %cst = arith.constant dense<0.000000e+00> : vector<512x128xf32>
    %5 = tpu.matmul %3, %4, %cst {dimension_numbers = #tpu.dot_dimension_numbers<[1], [0], [0], [1], [0, 0, 1, 1], [], []>} : vector<512x48xbf16>, vector<48x128xbf16>, vector<512x128xf32> -> vector<512x128xf32>
    %6 = arith.truncf %5 : vector<512x128xf32> to vector<512x128xbf16>
    %c0_4 = arith.constant 0 : index
    %c0_5 = arith.constant 0 : index
    %7 = vector.load %arg4[%c0_4, %c0_5] : memref<512x128xbf16, #tpu.memory_space<vmem>>, vector<512x128xbf16>
    tpu.vector_store %arg4[%c0_4, %c0_5], %6 {strides = array<i32>} : memref<512x128xbf16, #tpu.memory_space<vmem>>, vector<512x128xbf16>,
    %cst_6 = arith.constant dense<0.000000e+00> : vector<128xf32>
    %8 = vector.multi_reduction <add>, %5, %cst_6 [0] : vector<512x128xf32> to vector<128xf32>
    %9 = vector.shape_cast %8 : vector<128xf32> to vector<1x128xf32>
    %10 = arith.mulf %5, %5 : vector<512x128xf32>
    %cst_7 = arith.constant dense<0.000000e+00> : vector<128xf32>
    %11 = vector.multi_reduction <add>, %10, %cst_7 [0] : vector<512x128xf32> to vector<128xf32>
    %12 = vector.shape_cast %11 : vector<128xf32> to vector<1x128xf32>
    %c0_8 = arith.constant 0 : index
    %c0_9 = arith.constant 0 : index
    %13 = vector.load %arg5[%c0_8, %c0_9] : memref<8x128xf32, #tpu.memory_space<vmem>>, vector<8x128xf32>
    %14 = vector.shape_cast %9 : vector<1x128xf32> to vector<1x128xf32>
    %15 = vector.broadcast %14 : vector<1x128xf32> to vector<8x128xf32>
    %16 = arith.addf %13, %15 : vector<8x128xf32>
    %c0_10 = arith.constant 0 : index
    %c0_11 = arith.constant 0 : index
    %17 = vector.load %arg5[%c0_10, %c0_11] : memref<8x128xf32, #tpu.memory_space<vmem>>, vector<8x128xf32>
    tpu.vector_store %arg5[%c0_10, %c0_11], %16 {strides = array<i32>} : memref<8x128xf32, #tpu.memory_space<vmem>>, vector<8x128xf32>,
    %c0_12 = arith.constant 0 : index
    %c0_13 = arith.constant 0 : index
    %18 = vector.load %arg6[%c0_12, %c0_13] : memref<8x128xf32, #tpu.memory_space<vmem>>, vector<8x128xf32>
    %19 = vector.shape_cast %12 : vector<1x128xf32> to vector<1x128xf32>
    %20 = vector.broadcast %19 : vector<1x128xf32> to vector<8x128xf32>
    %21 = arith.addf %18, %20 : vector<8x128xf32>
    %c0_14 = arith.constant 0 : index
    %c0_15 = arith.constant 0 : index
    %22 = vector.load %arg6[%c0_14, %c0_15] : memref<8x128xf32, #tpu.memory_space<vmem>>, vector<8x128xf32>
    tpu.vector_store %arg6[%c0_14, %c0_15], %21 {strides = array<i32>} : memref<8x128xf32, #tpu.memory_space<vmem>>, vector<8x128xf32>,
    return
  }
  func.func @transform_0(%arg0: i32, %arg1: i32) -> (i32, i32) {
    %c1_i32 = arith.constant 1 : i32
    %0 = arith.muli %arg0, %c1_i32 : i32
    %1 = arith.addi %0, %arg1 : i32
    %c0_i32 = arith.constant 0 : i32
    %c0_i32_0 = arith.constant 0 : i32
    return %1, %c0_i32 : i32, i32
  }
  func.func @transform_1(%arg0: i32, %arg1: i32) -> (i32, i32) {
    %c0_i32 = arith.constant 0 : i32
    %c0_i32_0 = arith.constant 0 : i32
    %c0_i32_1 = arith.constant 0 : i32
    return %c0_i32, %c0_i32_0 : i32, i32
  }
  func.func @transform_2(%arg0: i32, %arg1: i32) -> (i32, i32) {
    %c1_i32 = arith.constant 1 : i32
    %0 = arith.muli %arg0, %c1_i32 : i32
    %1 = arith.addi %0, %arg1 : i32
    %c0_i32 = arith.constant 0 : i32
    %c0_i32_0 = arith.constant 0 : i32
    return %1, %c0_i32 : i32, i32
  }
  func.func @transform_3(%arg0: i32, %arg1: i32) -> (i32, i32) {
    %c0_i32 = arith.constant 0 : i32
    %c0_i32_0 = arith.constant 0 : i32
    return %arg0, %c0_i32 : i32, i32
  }
  func.func @transform_4(%arg0: i32, %arg1: i32) -> (i32, i32) {
    %c0_i32 = arith.constant 0 : i32
    %c0_i32_0 = arith.constant 0 : i32
    return %arg0, %c0_i32 : i32, i32
  }
}

</mosaic_0001>

<bundles_post_ra>
// kernel: tpu_custom_call.1
= control target key start
LH: loop header
LB: loop body
LE: loop exit
PB: predicated region body
PF: predicated region fallthrough
CT: control target
= control target key end

     0   :  { %10 = vsyncpa [#allocation3], 0  ;;  %vm295_vm0 = vcmask 392192   ;;  %s2232_s0 = inlined_call_operand.vmem [shape: bf16[512,48], index: 0, kind: input, shape index: {}]   ;;  %s2233_s1 = inlined_call_operand.vmem [shape: bf16[48,128], index: 1, kind: input, shape index: {}]   ;;  %s2234_s2 = inlined_call_operand.hbm [shape: bf16[512,128], index: 2, kind: output, shape index: {0}]   ;;  %s2235_s3 = inlined_call_operand.hbm [shape: f32[8,128], index: 3, kind: output, shape index: {1}]   ;;  %s2236_s4 = inlined_call_operand.hbm [shape: f32[8,128], index: 4, kind: output, shape index: {2}]  }
   0x1   :  { %v1765_v0 = vld [vmem:[%s2233_s1 + $0x10] sm:$0xff]   ;;  %v1766_v1 = vld [vmem:[%s2233_s1 + $0x8] sm:$0xff]   ;;  %v1768_v2 = vld [vmem:[%s2232_s0] sm:$0xff]  }
   0x2   :  { %1683 = vmatprep.subr.bf16.mxu0 %v1765_v0  ;;  %1753 = vmatprep.subr.bf16.mxu1 %v1765_v0  ;;  %v1767_v3 = vld [vmem:[%s2233_s1] sm:$0xff]   ;;  %v1769_v4 = vld [vmem:[%s2232_s0 + $0x8] sm:$0xff]   ;;  %v1770_v5 = vld [vmem:[%s2232_s0 + $0x10] sm:$0xff]  }
   0x3   :  { %1684 = vmatpush3.bf16.msra.mxu0 %v1765_v0  ;;  %1756 = vmatpush3.bf16.msra.mxu1 %v1765_v0  ;;  %v1771_v6 = vld [vmem:[%s2232_s0 + $0x18] sm:$0xff]   ;;  %v1772_v7 = vld [vmem:[%s2232_s0 + $0x20] sm:$0xff]   ;;  %v1785_v9 = vld [vmem:[%s2232_s0 + $0x88] sm:$0xff]  }
   0x4   :  { %1685 = vmatprep.subr.bf16.mxu0 %v1766_v1  ;;  %1754 = vmatprep.subr.bf16.mxu1 %v1766_v1  ;;  %v1784_v8 = vld [vmem:[%s2232_s0 + $0x80] sm:$0xff]   ;;  %v1786_v10 = vld [vmem:[%s2232_s0 + $0x90] sm:$0xff]   ;;  %v1773_v11 = vld [vmem:[%s2232_s0 + $0x28] sm:$0xff]  }
   0x5   :  { %1689 = vmatprep.mubr.msk.bf16.mxu0 %vm295_vm0, %v1768_v2  ;;  %1721 = vmatprep.mubr.msk.bf16.mxu1 %vm295_vm0, %v1784_v8  ;;  %v1774_v12 = vld [vmem:[%s2232_s0 + $0x30] sm:$0xff]   ;;  %v1787_v13 = vld [vmem:[%s2232_s0 + $0x98] sm:$0xff]   ;;  %v1788_v14 = vld [vmem:[%s2232_s0 + $0xa0] sm:$0xff]  }
   0x6   :  { %v1775_v15 = vld [vmem:[%s2232_s0 + $0x38] sm:$0xff]   ;;  %v1789_v16 = vld [vmem:[%s2232_s0 + $0xa8] sm:$0xff]   ;;  %v1776_v17 = vld [vmem:[%s2232_s0 + $0x40] sm:$0xff]  }
   0x7   :  { %1686 = vmatpush3.bf16.msra.mxu0 %v1766_v1  ;;  %1757 = vmatpush3.bf16.msra.mxu1 %v1766_v1  ;;  %v1790_v18 = vld [vmem:[%s2232_s0 + $0xb0] sm:$0xff]  }
   0x8   :  { %1687 = vmatprep.subr.bf16.mxu0 %v1767_v3  ;;  %1755 = vmatprep.subr.bf16.mxu1 %v1767_v3 }
   0xb   :  { %1688 = vmatpush3.bf16.msra.mxu0 %v1767_v3  ;;  %1758 = vmatpush3.bf16.msra.mxu1 %v1767_v3 }
   0xe   :  { %1690 = vmatmul.mubr.msk.bf16.vlgmr.msra.gmra.mxu0 %vm295_vm0, %v1769_v4  ;;  %1722 = vmatmul.mubr.msk.bf16.vlgmr.msra.gmra.mxu1 %vm295_vm0, %v1785_v9 }
   0xf   :  { %1693 = vmatprep.mubr.msk.bf16.mxu0 %vm295_vm0, %v1770_v5  ;;  %1725 = vmatprep.mubr.msk.bf16.mxu1 %vm295_vm0, %v1786_v10 }
  0x16   :  { %1694 = vmatmul.mubr.msk.bf16.gmra.mxu0 %vm295_vm0, %v1771_v6  ;;  %1726 = vmatmul.mubr.msk.bf16.gmra.mxu1 %vm295_vm0, %v1787_v13 }
  0x17   :  { %1697 = vmatprep.mubr.msk.bf16.mxu0 %vm295_vm0, %v1772_v7  ;;  %1729 = vmatprep.mubr.msk.bf16.mxu1 %vm295_vm0, %v1788_v14 }
  0x1e   :  { %1698 = vmatmul.mubr.msk.bf16.gmra.mxu0 %vm295_vm0, %v1773_v11 }
  0x1f   :  { %1701 = vmatprep.mubr.msk.bf16.mxu0 %vm295_vm0, %v1774_v12 }
  0x20   :  { %11 = vsyncpa [#allocation5], 0  ;;  %1730 = vmatmul.mubr.msk.bf16.gmra.mxu1 %vm295_vm0, %v1789_v16  ;;  %v1777_v19 = vld [vmem:[%s2232_s0 + $0x48] sm:$0xff]   ;;  %v1791_v20 = vld [vmem:[%s2232_s0 + $0xb8] sm:$0xff]  }
  0x21   :  { %1733 = vmatprep.mubr.msk.bf16.mxu1 %vm295_vm0, %v1790_v18  ;;  %v1778_v21 = vld [vmem:[%s2232_s0 + $0x50] sm:$0xff]   ;;  %v1792_v22 = vld [vmem:[%s2232_s0 + $0xc0] sm:$0xff]   ;;  %v1779_v23 = vld [vmem:[%s2232_s0 + $0x58] sm:$0xff]  }
  0x22   :  { %v1793_v24 = vld [vmem:[%s2232_s0 + $0xc8] sm:$0xff]   ;;  %v1780_v25 = vld [vmem:[%s2232_s0 + $0x60] sm:$0xff]   ;;  %v1794_v26 = vld [vmem:[%s2232_s0 + $0xd0] sm:$0xff]  }
  0x23   :  { %v1781_v27 = vld [vmem:[%s2232_s0 + $0x68] sm:$0xff]   ;;  %v1795_v28 = vld [vmem:[%s2232_s0 + $0xd8] sm:$0xff]   ;;  %v1782_v29 = vld [vmem:[%s2232_s0 + $0x70] sm:$0xff]  }
  0x24   :  { %v1796_v30 = vld [vmem:[%s2232_s0 + $0xe0] sm:$0xff]   ;;  %v1783_v31 = vld [vmem:[%s2232_s0 + $0x78] sm:$0xff]   ;;  %v1797_v32 = vld [vmem:[%s2232_s0 + $0xe8] sm:$0xff]  }
  0x25   :  { %v1798_v33 = vld [vmem:[%s2232_s0 + $0xf0] sm:$0xff]   ;;  %v1799_v34 = vld [vmem:[%s2232_s0 + $0xf8] sm:$0xff]   ;;  %s1864_s0 = smov [#allocation2]  }
  0x26   :  { %1702 = vmatmul.mubr.msk.bf16.gmra.mxu0 %vm295_vm0, %v1775_v15  ;;  %s1218_s30 = sshll.u32 %s1864_s0, 4  ;;  %s1219_s30 = int_to_ptr.vmem [resolvable:$true] %s1218_s30 }
  0x27   :  { %1705 = vmatprep.mubr.msk.bf16.mxu0 %vm295_vm0, %v1776_v17  ;;  %s1800_s5 = scalar_lea.vmem %s1219_s30, 4096  ;;  %p1805_p1 = scmp.lt.s32.totalorder %s1219_s30, %s1219_s30 }
  0x28   :  { %1734 = vmatmul.mubr.msk.bf16.gmra.mxu1 %vm295_vm0, %v1791_v20  ;;  %p1801_p0 = scmp.ne.s32.totalorder %s1219_s30, %s1800_s5  ;;  %p1806_p2 = scmp.lt.s32.totalorder %s1800_s5, %s1800_s5 }
  0x29   :  { %1737 = vmatprep.mubr.msk.bf16.mxu1 %vm295_vm0, %v1792_v22 }
  0x2a   :  { %p1807_p3 = por %p1806_p2, %p1805_p1 }
  0x2c   :  { %p1808_p4 = pnand %p1807_p3, %p1801_p0 }
  0x2e   :  { %1706 = vmatmul.mubr.msk.bf16.gmra.mxu0 %vm295_vm0, %v1777_v19 }
  0x2f   :  { %1709 = vmatprep.mubr.msk.bf16.mxu0 %vm295_vm0, %v1778_v21 }
  0x30   :  { %1738 = vmatmul.mubr.msk.bf16.gmra.mxu1 %vm295_vm0, %v1793_v24 }
  0x31   :  { %1741 = vmatprep.mubr.msk.bf16.mxu1 %vm295_vm0, %v1794_v26 }
  0x36   :  { %1710 = vmatmul.mubr.msk.bf16.gmra.mxu0 %vm295_vm0, %v1779_v23 }
  0x37   :  { %1713 = vmatprep.mubr.msk.bf16.mxu0 %vm295_vm0, %v1780_v25 }
  0x38   :  { %1742 = vmatmul.mubr.msk.bf16.gmra.mxu1 %vm295_vm0, %v1795_v28 }
  0x39   :  { %1745 = vmatprep.mubr.msk.bf16.mxu1 %vm295_vm0, %v1796_v30 }
  0x3e   :  { %1714 = vmatmul.mubr.msk.bf16.gmra.mxu0 %vm295_vm0, %v1781_v27 }
  0x3f   :  { %1717 = vmatprep.mubr.msk.bf16.mxu0 %vm295_vm0, %v1782_v29 }
  0x40   :  { %1746 = vmatmul.mubr.msk.bf16.gmra.mxu1 %vm295_vm0, %v1797_v32 }
  0x41   :  { %1749 = vmatprep.mubr.msk.bf16.mxu1 %vm295_vm0, %v1798_v33 }
  0x46   :  { %1718 = vmatmul.mubr.msk.bf16.gmra.mxu0 %vm295_vm0, %v1783_v31 }
  0x48   :  { %1750 = vmatmul.mubr.msk.bf16.gmra.mxu1 %vm295_vm0, %v1799_v34 }
  0xce   :  { %v1691_v35 = vpop.f32.mrf.mxu0  ;;  %v2031_v45 = vpop.f32.mrf.mxu1 }
  0xcf   :  { %v1072_v46 = vmul.f32 %v1691_v35, %v1691_v35 }
  0xd0   :  { %v426_v36 = vpop.f32.mrf.mxu0  ;;  %v2033_v50 = vpop.f32.mrf.mxu1 }
  0xd1   :  { %v1070_v40 = vmul.f32 %v426_v36, %v426_v36 }
  0xd2   :  { %v1692_v37 = vpop.f32.mrf.mxu0  ;;  %v2035_v55 = vpop.f32.mrf.mxu1 }
  0xd3   :  { %v1465_v38 = vpack.c.bf16 %v1692_v37, %v1691_v35  ;;  %v1073_v51 = vmul.f32 %v1692_v37, %v1692_v37  ;;  %v1545_v61 = vpack.c.bf16 %v2035_v55, %v2031_v45 }
  0xd4   :  { %v429_v39 = vpop.f32.mrf.mxu0  ;;  %v2039_v62 = vpop.f32.mrf.mxu1 }
  0xd5   :  { %1617 = vst [vmem:[#allocation2 + $0x8] sm:$0xff] %v1465_v38   ;;  %v1460_v41 = vpack.c.bf16 %v429_v39, %v426_v36  ;;  %v1001_v42 = vadd.f32 %v429_v39, %v426_v36  ;;  %v1071_v43 = vmul.f32 %v429_v39, %v429_v39  ;;  %1633 = vst [vmem:[#allocation2 + $0x88] sm:$0xff] %v1545_v61  }
  0xd6   :  { %v1695_v44 = vpop.f32.mrf.mxu0  ;;  %v1540_v4 = vpack.c.bf16 %v2039_v62, %v2033_v50  ;;  %v2043_v5 = vpop.f32.mrf.mxu1 }
  0xd7   :  { %1461 = vst [vmem:[#allocation2] sm:$0xff] %v1460_v41   ;;  %v1002_v47 = vadd.f32 %v1691_v35, %v1001_v42  ;;  %v1134_v48 = vadd.f32 %v1071_v43, %v1070_v40  ;;  %v1076_v6 = vmul.f32 %v1695_v44, %v1695_v44 }
  0xd8   :  { %v442_v49 = vpop.f32.mrf.mxu0  ;;  %1632 = vst [vmem:[#allocation2 + $0x80] sm:$0xff] %v1540_v4   ;;  %v2045_v10 = vpop.f32.mrf.mxu1 }
  0xd9   :  { %v1135_v52 = vadd.f32 %v1134_v48, %v1072_v46  ;;  %v1003_v53 = vadd.f32 %v1692_v37, %v1002_v47  ;;  %v1074_v57 = vmul.f32 %v442_v49, %v442_v49 }
  0xda   :  { %v1696_v54 = vpop.f32.mrf.mxu0  ;;  %v2047_v15 = vpop.f32.mrf.mxu1 }
  0xdb   :  { %v1004_v56 = vadd.f32 %v1003_v53, %v442_v49  ;;  %v1136_v58 = vadd.f32 %v1135_v52, %v1073_v51  ;;  %v1475_v59 = vpack.c.bf16 %v1696_v54, %v1695_v44  ;;  %v1077_v11 = vmul.f32 %v1696_v54, %v1696_v54 }
  0xdc   :  { %v445_v60 = vpop.f32.mrf.mxu0  ;;  %v1555_v21 = vpack.c.bf16 %v2047_v15, %v2043_v5  ;;  %v2051_v22 = vpop.f32.mrf.mxu1 }
  0xdd   :  { %v1137_v63 = vadd.f32 %v1136_v58, %v1074_v57  ;;  %1619 = vst [vmem:[#allocation2 + $0x18] sm:$0xff] %v1475_v59   ;;  %v1470_v0 = vpack.c.bf16 %v445_v60, %v442_v49  ;;  %v1005_v1 = vadd.f32 %v1004_v56, %v445_v60  ;;  %v1075_v2 = vmul.f32 %v445_v60, %v445_v60 }
  0xde   :  { %v1699_v3 = vpop.f32.mrf.mxu0  ;;  %1635 = vst [vmem:[#allocation2 + $0x98] sm:$0xff] %v1555_v21   ;;  %v1550_v28 = vpack.c.bf16 %v2051_v22, %v2045_v10 }
  0xdf   :  { %1618 = vst [vmem:[#allocation2 + $0x10] sm:$0xff] %v1470_v0   ;;  %v1006_v7 = vadd.f32 %v1695_v44, %v1005_v1  ;;  %v1138_v8 = vadd.f32 %v1137_v63, %v1075_v2  ;;  %v1080_v30 = vmul.f32 %v1699_v3, %v1699_v3 }
  0xe0   :  { %v458_v9 = vpop.f32.mrf.mxu0  ;;  %v2055_v29 = vpop.f32.mrf.mxu1  ;;  %1634 = vst [vmem:[#allocation2 + $0x90] sm:$0xff] %v1550_v28  }
  0xe1   :  { %v1139_v12 = vadd.f32 %v1138_v8, %v1076_v6  ;;  %v1007_v13 = vadd.f32 %v1696_v54, %v1006_v7  ;;  %v1078_v17 = vmul.f32 %v458_v9, %v458_v9 }
  0xe2   :  { %v1700_v14 = vpop.f32.mrf.mxu0  ;;  %v2057_v34 = vpop.f32.mrf.mxu1 }
  0xe3   :  { %v1008_v16 = vadd.f32 %v1007_v13, %v458_v9  ;;  %v1140_v18 = vadd.f32 %v1139_v12, %v1077_v11  ;;  %v1485_v19 = vpack.c.bf16 %v1700_v14, %v1699_v3  ;;  %v1081_v35 = vmul.f32 %v1700_v14, %v1700_v14 }
  0xe4   :  { %v461_v20 = vpop.f32.mrf.mxu0  ;;  %v2059_v39 = vpop.f32.mrf.mxu1 }
  0xe5   :  { %v1141_v23 = vadd.f32 %v1140_v18, %v1078_v17  ;;  %1621 = vst [vmem:[#allocation2 + $0x28] sm:$0xff] %v1485_v19   ;;  %v1480_v24 = vpack.c.bf16 %v461_v20, %v458_v9  ;;  %v1009_v25 = vadd.f32 %v1008_v16, %v461_v20  ;;  %v1079_v26 = vmul.f32 %v461_v20, %v461_v20 }
  0xe6   :  { %v1703_v27 = vpop.f32.mrf.mxu0  ;;  %v1565_v46 = vpack.c.bf16 %v2059_v39, %v2055_v29  ;;  %v2063_v47 = vpop.f32.mrf.mxu1 }
  0xe7   :  { %1620 = vst [vmem:[#allocation2 + $0x20] sm:$0xff] %v1480_v24   ;;  %v1010_v31 = vadd.f32 %v1699_v3, %v1009_v25  ;;  %v1142_v32 = vadd.f32 %v1141_v23, %v1079_v26  ;;  %v1560_v54 = vpack.c.bf16 %v2063_v47, %v2057_v34  ;;  %v1084_v57 = vmul.f32 %v1703_v27, %v1703_v27 }
  0xe8   :  { %v474_v33 = vpop.f32.mrf.mxu0  ;;  %1637 = vst [vmem:[#allocation2 + $0xa8] sm:$0xff] %v1565_v46   ;;  %v2067_v56 = vpop.f32.mrf.mxu1 }
  0xe9   :  { %v1143_v36 = vadd.f32 %v1142_v32, %v1080_v30  ;;  %v1011_v37 = vadd.f32 %v1700_v14, %v1010_v31  ;;  %v1082_v41 = vmul.f32 %v474_v33, %v474_v33  ;;  %1636 = vst [vmem:[#allocation2 + $0xa0] sm:$0xff] %v1560_v54  }
  0xea   :  { %v1704_v38 = vpop.f32.mrf.mxu0  ;;  %v2069_v61 = vpop.f32.mrf.mxu1 }
  0xeb   :  { %v1012_v40 = vadd.f32 %v1011_v37, %v474_v33  ;;  %v1144_v42 = vadd.f32 %v1143_v36, %v1081_v35  ;;  %v1495_v43 = vpack.c.bf16 %v1704_v38, %v1703_v27  ;;  %v1085_v63 = vmul.f32 %v1704_v38, %v1704_v38 }
  0xec   :  { %v477_v44 = vpop.f32.mrf.mxu0  ;;  %v2071_v3 = vpop.f32.mrf.mxu1 }
  0xed   :  { %v1145_v48 = vadd.f32 %v1144_v42, %v1082_v41  ;;  %1623 = vst [vmem:[#allocation2 + $0x38] sm:$0xff] %v1495_v43   ;;  %v1490_v49 = vpack.c.bf16 %v477_v44, %v474_v33  ;;  %v1013_v51 = vadd.f32 %v1012_v40, %v477_v44  ;;  %v1083_v52 = vmul.f32 %v477_v44, %v477_v44 }
  0xee   :  { %v1707_v53 = vpop.f32.mrf.mxu0  ;;  %v1575_v11 = vpack.c.bf16 %v2071_v3, %v2067_v56  ;;  %v2075_v12 = vpop.f32.mrf.mxu1 }
  0xef   :  { %1622 = vst [vmem:[#allocation2 + $0x30] sm:$0xff] %v1490_v49   ;;  %v1014_v58 = vadd.f32 %v1703_v27, %v1013_v51  ;;  %v1146_v59 = vadd.f32 %v1145_v48, %v1083_v52  ;;  %v1570_v19 = vpack.c.bf16 %v2075_v12, %v2069_v61  ;;  %v1088_v21 = vmul.f32 %v1707_v53, %v1707_v53 }
  0xf0   :  { %v490_v60 = vpop.f32.mrf.mxu0  ;;  %1639 = vst [vmem:[#allocation2 + $0xb8] sm:$0xff] %v1575_v11   ;;  %v2079_v20 = vpop.f32.mrf.mxu1 }
  0xf1   :  { %v1147_v0 = vadd.f32 %v1146_v59, %v1084_v57  ;;  %v1015_v1 = vadd.f32 %v1704_v38, %v1014_v58  ;;  %v1086_v6 = vmul.f32 %v490_v60, %v490_v60  ;;  %1638 = vst [vmem:[#allocation2 + $0xb0] sm:$0xff] %v1570_v19  }
  0xf2   :  { %v1708_v2 = vpop.f32.mrf.mxu0  ;;  %v2081_v26 = vpop.f32.mrf.mxu1 }
  0xf3   :  { %v1016_v4 = vadd.f32 %v1015_v1, %v490_v60  ;;  %v1148_v7 = vadd.f32 %v1147_v0, %v1085_v63  ;;  %v1505_v8 = vpack.c.bf16 %v1708_v2, %v1707_v53  ;;  %v1089_v27 = vmul.f32 %v1708_v2, %v1708_v2 }
  0xf4   :  { %v493_v9 = vpop.f32.mrf.mxu0  ;;  %v2083_v32 = vpop.f32.mrf.mxu1 }
  0xf5   :  { %v1149_v13 = vadd.f32 %v1148_v7, %v1086_v6  ;;  %1625 = vst [vmem:[#allocation2 + $0x48] sm:$0xff] %v1505_v8   ;;  %v1500_v14 = vpack.c.bf16 %v493_v9, %v490_v60  ;;  %v1017_v16 = vadd.f32 %v1016_v4, %v493_v9  ;;  %v1087_v17 = vmul.f32 %v493_v9, %v493_v9 }
  0xf6   :  { %v1711_v18 = vpop.f32.mrf.mxu0  ;;  %v1585_v40 = vpack.c.bf16 %v2083_v32, %v2079_v20  ;;  %v2087_v41 = vpop.f32.mrf.mxu1 }
  0xf7   :  { %1624 = vst [vmem:[#allocation2 + $0x40] sm:$0xff] %v1500_v14   ;;  %v1018_v23 = vadd.f32 %v1707_v53, %v1017_v16  ;;  %v1150_v24 = vadd.f32 %v1149_v13, %v1087_v17  ;;  %v1580_v49 = vpack.c.bf16 %v2087_v41, %v2081_v26  ;;  %v1092_v52 = vmul.f32 %v1711_v18, %v1711_v18 }
  0xf8   :  { %v506_v25 = vpop.f32.mrf.mxu0  ;;  %1641 = vst [vmem:[#allocation2 + $0xc8] sm:$0xff] %v1585_v40   ;;  %v2091_v51 = vpop.f32.mrf.mxu1 }
  0xf9   :  { %v1151_v28 = vadd.f32 %v1150_v24, %v1088_v21  ;;  %v1019_v30 = vadd.f32 %v1708_v2, %v1018_v23  ;;  %v1090_v35 = vmul.f32 %v506_v25, %v506_v25  ;;  %1640 = vst [vmem:[#allocation2 + $0xc0] sm:$0xff] %v1580_v49  }
  0xfa   :  { %v1712_v31 = vpop.f32.mrf.mxu0  ;;  %v2093_v58 = vpop.f32.mrf.mxu1 }
  0xfb   :  { %v1020_v33 = vadd.f32 %v1019_v30, %v506_v25  ;;  %v1152_v36 = vadd.f32 %v1151_v28, %v1089_v27  ;;  %v1515_v37 = vpack.c.bf16 %v1712_v31, %v1711_v18  ;;  %v1093_v59 = vmul.f32 %v1712_v31, %v1712_v31 }
  0xfc   :  { %v509_v38 = vpop.f32.mrf.mxu0  ;;  %v2095_v1 = vpop.f32.mrf.mxu1 }
  0xfd   :  { %v1153_v42 = vadd.f32 %v1152_v36, %v1090_v35  ;;  %1627 = vst [vmem:[#allocation2 + $0x58] sm:$0xff] %v1515_v37   ;;  %v1510_v43 = vpack.c.bf16 %v509_v38, %v506_v25  ;;  %v1021_v44 = vadd.f32 %v1020_v33, %v509_v38  ;;  %v1091_v46 = vmul.f32 %v509_v38, %v509_v38 }
  0xfe   :  { %v1715_v48 = vpop.f32.mrf.mxu0  ;;  %v1595_v9 = vpack.c.bf16 %v2095_v1, %v2091_v51  ;;  %v2099_v11 = vpop.f32.mrf.mxu1 }
  0xff   :  { %1626 = vst [vmem:[#allocation2 + $0x50] sm:$0xff] %v1510_v43   ;;  %v1022_v53 = vadd.f32 %v1711_v18, %v1021_v44  ;;  %v1154_v54 = vadd.f32 %v1153_v42, %v1091_v46  ;;  %v1590_v19 = vpack.c.bf16 %v2099_v11, %v2093_v58  ;;  %v1096_v23 = vmul.f32 %v1715_v48, %v1715_v48 }
 0x100   :  { %v522_v57 = vpop.f32.mrf.mxu0  ;;  %1643 = vst [vmem:[#allocation2 + $0xd8] sm:$0xff] %v1595_v9   ;;  %v2103_v21 = vpop.f32.mrf.mxu1 }
 0x101   :  { %v1155_v60 = vadd.f32 %v1154_v54, %v1092_v52  ;;  %v1023_v63 = vadd.f32 %v1712_v31, %v1022_v53  ;;  %v1094_v4 = vmul.f32 %v522_v57, %v522_v57  ;;  %1642 = vst [vmem:[#allocation2 + $0xd0] sm:$0xff] %v1590_v19  }
 0x102   :  { %v1716_v0 = vpop.f32.mrf.mxu0  ;;  %v2105_v28 = vpop.f32.mrf.mxu1 }
 0x103   :  { %v1024_v2 = vadd.f32 %v1023_v63, %v522_v57  ;;  %v1156_v6 = vadd.f32 %v1155_v60, %v1093_v59  ;;  %v1525_v7 = vpack.c.bf16 %v1716_v0, %v1715_v48  ;;  %v1097_v30 = vmul.f32 %v1716_v0, %v1716_v0 }
 0x104   :  { %v525_v8 = vpop.f32.mrf.mxu0  ;;  %v2107_v36 = vpop.f32.mrf.mxu1 }
 0x105   :  { %v1157_v13 = vadd.f32 %v1156_v6, %v1094_v4  ;;  %1629 = vst [vmem:[#allocation2 + $0x68] sm:$0xff] %v1525_v7   ;;  %v1520_v14 = vpack.c.bf16 %v525_v8, %v522_v57  ;;  %v1025_v16 = vadd.f32 %v1024_v2, %v525_v8  ;;  %v1095_v17 = vmul.f32 %v525_v8, %v525_v8 }
 0x106   :  { %v1719_v18 = vpop.f32.mrf.mxu0  ;;  %v1605_v44 = vpack.c.bf16 %v2107_v36, %v2103_v21  ;;  %v2111_v46 = vpop.f32.mrf.mxu1  ;;  %v1102_v8 = vmul.f32 %v2033_v50, %v2033_v50 }
 0x107   :  { %1628 = vst [vmem:[#allocation2 + $0x60] sm:$0xff] %v1520_v14   ;;  %v1026_v24 = vadd.f32 %v1715_v48, %v1025_v16  ;;  %v1158_v25 = vadd.f32 %v1157_v13, %v1095_v17  ;;  %v1600_v54 = vpack.c.bf16 %v2111_v46, %v2105_v28  ;;  %v1100_v59 = vmul.f32 %v1719_v18, %v1719_v18 }
 0x108   :  { %v538_v27 = vpop.f32.mrf.mxu0  ;;  %1645 = vst [vmem:[#allocation2 + $0xe8] sm:$0xff] %v1605_v44   ;;  %v2115_v57 = vpop.f32.mrf.mxu1 }
 0x109   :  { %v1159_v31 = vadd.f32 %v1158_v25, %v1096_v23  ;;  %v1027_v33 = vadd.f32 %v1716_v0, %v1026_v24  ;;  %v1098_v38 = vmul.f32 %v538_v27, %v538_v27  ;;  %1644 = vst [vmem:[#allocation2 + $0xe0] sm:$0xff] %v1600_v54   ;;  %v1104_v24 = vmul.f32 %v2031_v45, %v2031_v45 }
 0x10a   :  { %v1720_v35 = vpop.f32.mrf.mxu0  ;;  %v2117_v0 = vpop.f32.mrf.mxu1 }
 0x10b   :  { %v1028_v37 = vadd.f32 %v1027_v33, %v538_v27  ;;  %v1160_v40 = vadd.f32 %v1159_v31, %v1097_v30  ;;  %v1535_v42 = vpack.c.bf16 %v1720_v35, %v1719_v18  ;;  %v1101_v2 = vmul.f32 %v1720_v35, %v1720_v35 }
 0x10c   :  { %v541_v43 = vpop.f32.mrf.mxu0  ;;  %v2119_v7 = vpop.f32.mrf.mxu1 }
 0x10d   :  { %v1161_v48 = vadd.f32 %v1160_v40, %v1098_v38  ;;  %1631 = vst [vmem:[#allocation2 + $0x78] sm:$0xff] %v1535_v42   ;;  %v1530_v49 = vpack.c.bf16 %v541_v43, %v538_v27  ;;  %v1029_v52 = vadd.f32 %v1028_v37, %v541_v43  ;;  %v1099_v53 = vmul.f32 %v541_v43, %v541_v43 }
 0x10e   :  { %v1615_v14 = vpack.c.bf16 %v2119_v7, %v2115_v57  ;;  %v2126_v16 = vpop.f32.mrf.mxu1 }
 0x10f   :  { %1630 = vst [vmem:[#allocation2 + $0x70] sm:$0xff] %v1530_v49   ;;  %v1030_v60 = vadd.f32 %v1719_v18, %v1029_v52  ;;  %v1162_v63 = vadd.f32 %v1161_v48, %v1099_v53  ;;  %v1103_v18 = vmul.f32 %v2039_v62, %v2039_v62  ;;  %v1610_v23 = vpack.c.bf16 %v2126_v16, %v2117_v0 }
 0x110   :  { %1647 = vst [vmem:[#allocation2 + $0xf8] sm:$0xff] %v1615_v14  }
 0x111   :  { %v1031_v4 = vadd.f32 %v1720_v35, %v1030_v60  ;;  %v1163_v6 = vadd.f32 %v1162_v63, %v1100_v59  ;;  %1646 = vst [vmem:[#allocation2 + $0xf0] sm:$0xff] %v1610_v23  }
 0x113   :  { %v1164_v9 = vadd.f32 %v1163_v6, %v1101_v2  ;;  %v1032_v13 = vadd.f32 %v1031_v4, %v2033_v50 }
 0x115   :  { %v1033_v17 = vadd.f32 %v1032_v13, %v2039_v62  ;;  %v1165_v19 = vadd.f32 %v1164_v9, %v1102_v8 }
 0x117   :  { %v1034_v50 = vadd.f32 %v2031_v45, %v1033_v17  ;;  %v1166_v25 = vadd.f32 %v1165_v19, %v1103_v18 }
 0x118   :  { %1811 = shalt.err (!%p1808_p4)
}
 0x119   :  { %s1865_s6 = smov 64   ;;  %s1866_s7 = smov 4   ;;  %v1105_v62 = vmul.f32 %v2035_v55, %v2035_v55  ;;  %v1167_v27 = vadd.f32 %v1166_v25, %v1104_v24  ;;  %v1035_v45 = vadd.f32 %v2035_v55, %v1034_v50  ;;  %v1106_v31 = vmul.f32 %v2045_v10, %v2045_v10 }
 0x11a   :  { %1224 = dma.vmem_to_hbm [thread:$0]  %s1219_s30, 4096, %s2234_s2, [#allocation3], %s1865_s6, %s1865_s6, %s1866_s7   ;;  %v1107_v38 = vmul.f32 %v2051_v22, %v2051_v22  ;;  %v1108_v40 = vmul.f32 %v2043_v5, %v2043_v5  ;;  %v1109_v55 = vmul.f32 %v2047_v15, %v2047_v15  ;;  %v1110_v49 = vmul.f32 %v2057_v34, %v2057_v34 }
 0x11b   :  { %v1036_v30 = vadd.f32 %v1035_v45, %v2045_v10  ;;  %v1168_v33 = vadd.f32 %v1167_v27, %v1105_v62  ;;  %v1111_v54 = vmul.f32 %v2063_v47, %v2063_v47  ;;  %v1114_v4 = vmul.f32 %v2069_v61, %v2069_v61  ;;  %s1867_s2 = smov [#allocation4]   ;;  %s1868_s11 = smov [#allocation6]  }
 0x11c   :  { %v1115_v9 = vmul.f32 %v2075_v12, %v2075_v12  ;;  %v1118_v19 = vmul.f32 %v2081_v26, %v2081_v26  ;;  %v1119_v50 = vmul.f32 %v2087_v41, %v2087_v41  ;;  %s1231_s10 = sshll.u32 %s1867_s2, 4  ;;  %s1241_s12 = sshll.u32 %s1868_s11, 4  ;;  %s1232_s10 = int_to_ptr.vmem [resolvable:$true] %s1231_s10  ;;  %s1242_s12 = int_to_ptr.vmem [resolvable:$true] %s1241_s12 }
 0x11d   :  { %v1169_v35 = vadd.f32 %v1168_v33, %v1106_v31  ;;  %v1037_v37 = vadd.f32 %v1036_v30, %v2051_v22  ;;  %v1122_v30 = vmul.f32 %v2093_v58, %v2093_v58  ;;  %s1820_s13 = scalar_lea.vmem %s1232_s10, 128  ;;  %p1825_p6 = scmp.lt.s32.totalorder %s1232_s10, %s1232_s10 }
 0x11e   :  { %p1821_p5 = scmp.ne.s32.totalorder %s1232_s10, %s1820_s13  ;;  %p1826_p7 = scmp.lt.s32.totalorder %s1820_s13, %s1820_s13 }
 0x11f   :  { %v1038_v42 = vadd.f32 %v2043_v5, %v1037_v37  ;;  %v1170_v43 = vadd.f32 %v1169_v35, %v1107_v38  ;;  %v1112_v5 = vmul.f32 %v2055_v29, %v2055_v29  ;;  %v1123_v35 = vmul.f32 %v2099_v11, %v2099_v11 }
 0x120   :  { %p1827_p8 = por %p1826_p7, %p1825_p6 }
 0x121   :  { %v1171_v44 = vadd.f32 %v1170_v43, %v1108_v40  ;;  %v1039_v48 = vadd.f32 %v2047_v15, %v1038_v42  ;;  %v1113_v15 = vmul.f32 %v2059_v39, %v2059_v39  ;;  %v1126_v43 = vmul.f32 %v2105_v28, %v2105_v28 }
 0x122   :  { %p1828_p9 = pnand %p1827_p8, %p1821_p5 }
 0x123   :  { %v1040_v10 = vadd.f32 %v1039_v48, %v2057_v34  ;;  %v1172_v52 = vadd.f32 %v1171_v44, %v1109_v55  ;;  %v1127_v48 = vmul.f32 %v2111_v46, %v2111_v46 }
 0x125   :  { %v1173_v53 = vadd.f32 %v1172_v52, %v1110_v49  ;;  %v1041_v22 = vadd.f32 %v1040_v10, %v2063_v47 }
 0x127   :  { %v1042_v59 = vadd.f32 %v2055_v29, %v1041_v22  ;;  %v1174_v60 = vadd.f32 %v1173_v53, %v1111_v54  ;;  %v1116_v29 = vmul.f32 %v2067_v56, %v2067_v56  ;;  %v1130_v22 = vmul.f32 %v2117_v0, %v2117_v0 }
 0x129   :  { %v1175_v63 = vadd.f32 %v1174_v60, %v1112_v5  ;;  %v1043_v2 = vadd.f32 %v2059_v39, %v1042_v59  ;;  %v1117_v39 = vmul.f32 %v2071_v3, %v2071_v3  ;;  %v1131_v59 = vmul.f32 %v2126_v16, %v2126_v16 }
 0x12b   :  { %v1044_v34 = vadd.f32 %v1043_v2, %v2069_v61  ;;  %v1176_v6 = vadd.f32 %v1175_v63, %v1113_v15 }
 0x12d   :  { %v1177_v8 = vadd.f32 %v1176_v6, %v1114_v4  ;;  %v1045_v47 = vadd.f32 %v1044_v34, %v2075_v12 }
 0x12f   :  { %v1046_v13 = vadd.f32 %v2067_v56, %v1045_v47  ;;  %v1178_v14 = vadd.f32 %v1177_v8, %v1115_v9  ;;  %v1120_v56 = vmul.f32 %v2079_v20, %v2079_v20 }
 0x131   :  { %v1179_v17 = vadd.f32 %v1178_v14, %v1116_v29  ;;  %v1047_v18 = vadd.f32 %v2071_v3, %v1046_v13  ;;  %v1121_v3 = vmul.f32 %v2083_v32, %v2083_v32 }
 0x133   :  { %v1048_v61 = vadd.f32 %v1047_v18, %v2081_v26  ;;  %v1180_v23 = vadd.f32 %v1179_v17, %v1117_v39 }
 0x135   :  { %v1181_v24 = vadd.f32 %v1180_v23, %v1118_v19  ;;  %v1049_v12 = vadd.f32 %v1048_v61, %v2087_v41 }
 0x137   :  { %v1050_v25 = vadd.f32 %v2079_v20, %v1049_v12  ;;  %v1182_v62 = vadd.f32 %v1181_v24, %v1119_v50  ;;  %v1124_v20 = vmul.f32 %v2091_v51, %v2091_v51 }
 0x139   :  { %v1183_v27 = vadd.f32 %v1182_v62, %v1120_v56  ;;  %v1051_v45 = vadd.f32 %v2083_v32, %v1050_v25  ;;  %v1125_v32 = vmul.f32 %v2095_v1, %v2095_v1 }
 0x13b   :  { %v1052_v26 = vadd.f32 %v1051_v45, %v2093_v58  ;;  %v1184_v31 = vadd.f32 %v1183_v27, %v1121_v3 }
 0x13d   :  { %v1185_v33 = vadd.f32 %v1184_v31, %v1122_v30  ;;  %v1053_v41 = vadd.f32 %v1052_v26, %v2099_v11 }
 0x13f   :  { %v1054_v37 = vadd.f32 %v2091_v51, %v1053_v41  ;;  %v1186_v38 = vadd.f32 %v1185_v33, %v1123_v35  ;;  %v1128_v51 = vmul.f32 %v2103_v21, %v2103_v21 }
 0x141   :  { %v1187_v40 = vadd.f32 %v1186_v38, %v1124_v20  ;;  %v1055_v42 = vadd.f32 %v2095_v1, %v1054_v37  ;;  %v1129_v1 = vmul.f32 %v2107_v36, %v2107_v36 }
 0x143   :  { %v1056_v58 = vadd.f32 %v1055_v42, %v2105_v28  ;;  %v1188_v55 = vadd.f32 %v1187_v40, %v1125_v32 }
 0x145   :  { %v1189_v44 = vadd.f32 %v1188_v55, %v1126_v43  ;;  %v1057_v11 = vadd.f32 %v1056_v58, %v2111_v46 }
 0x147   :  { %v1058_v10 = vadd.f32 %v2103_v21, %v1057_v11  ;;  %v1190_v49 = vadd.f32 %v1189_v44, %v1127_v48  ;;  %v1132_v21 = vmul.f32 %v2115_v57, %v2115_v57 }
 0x149   :  { %v1191_v52 = vadd.f32 %v1190_v49, %v1128_v51  ;;  %v1059_v53 = vadd.f32 %v2107_v36, %v1058_v10  ;;  %v1133_v36 = vmul.f32 %v2119_v7, %v2119_v7 }
 0x14b   :  { %v1060_v28 = vadd.f32 %v1059_v53, %v2117_v0  ;;  %v1192_v54 = vadd.f32 %v1191_v52, %v1129_v1 }
 0x14d   :  { %v1193_v5 = vadd.f32 %v1192_v54, %v1130_v22  ;;  %v1061_v46 = vadd.f32 %v1060_v28, %v2126_v16 }
 0x14f   :  { %v1062_v60 = vadd.f32 %v2115_v57, %v1061_v46  ;;  %v1194_v15 = vadd.f32 %v1193_v5, %v1131_v59 }
 0x151   :  { %v1063_v63 = vadd.f32 %v2119_v7, %v1062_v60  ;;  %v1195_v2 = vadd.f32 %v1194_v15, %v1132_v21 }
 0x153   :  { %v1064_v0 = vrot.slane %v1063_v63, 4  ;;  %v1196_v34 = vadd.f32 %v1195_v2, %v1133_v36 }
 0x155   :  { %v1065_v4 = vadd.f32 %v1064_v0, %v1063_v63  ;;  %v1197_v6 = vrot.slane %v1196_v34, 4 }
 0x157   :  { %v1066_v8 = vrot.slane %v1065_v4, 2  ;;  %v1198_v47 = vadd.f32 %v1197_v6, %v1196_v34 }
 0x159   :  { %v1067_v9 = vadd.f32 %v1066_v8, %v1065_v4  ;;  %v1199_v16 = vrot.slane %v1198_v47, 2 }
 0x15b   :  { %v1068_v29 = vrot.slane %v1067_v9, 1  ;;  %v1200_v13 = vadd.f32 %v1199_v16, %v1198_v47 }
 0x15d   :  { %v1069_v57 = vadd.f32 %v1068_v29, %v1067_v9  ;;  %v1201_v14 = vrot.slane %v1200_v13, 1 }
 0x15f   :  { %v1202_v39 = vadd.f32 %v1201_v14, %v1200_v13  ;;  %1205 = vst [vmem:[#allocation4] sm:$0xff] %v1069_v57 }
 0x160   :  { %1831 = shalt.err (!%p1828_p9)
}
 0x161   :  { %1234 = dma.vmem_to_hbm [thread:$0]  %s1232_s10, 128, %s2235_s3, [#allocation5]   ;;  %1208 = vst [vmem:[#allocation6] sm:$0xff] %v1202_v39 }
 0x162   :  { %s1840_s16 = scalar_lea.vmem %s1242_s12, 128  ;;  %p1845_p11 = scmp.lt.s32.totalorder %s1242_s12, %s1242_s12 }
 0x163   :  { %p1841_p10 = scmp.ne.s32.totalorder %s1242_s12, %s1840_s16  ;;  %p1846_p12 = scmp.lt.s32.totalorder %s1840_s16, %s1840_s16 }
 0x165   :  { %p1847_p13 = por %p1846_p12, %p1845_p11 }
 0x167   :  { %p1848_p0 = pnand %p1847_p13, %p1841_p10 }
 0x169   :  { %1851 = shalt.err (!%p1848_p0)
}
 0x16a   :  { %1244 = dma.vmem_to_hbm [thread:$0]  %s1242_s12, 128, %s2236_s4, [#allocation5]  }
 0x16b   :  { %1860 = dma.done.wait [#allocation3], 4096  }
 0x16c   :  { %1861 = vsyncadd [#allocation3], 4294963200 }
 0x16d   :  { %1862 = dma.done.wait [#allocation5], 256  }
 0x16e   :  { %1863 = vsyncadd [#allocation5], 4294967040 }
 0x16f   :  { %1254 = vsyncpa [#allocation3], 1 }
 0x170   :  { %1255 = vsyncpa [#allocation5], 1 }

</bundles_post_ra>
